<compile_context>
chip_gen: v5e
topology: v5e:2x2
jax: 0.10.0
libtpu: 0.0.40
codegen_flags: <defaults>
</compile_context>

<pallas_src>
import jax
import jax.numpy as jnp
from jax.experimental import pallas as pl
from jax.experimental.pallas import tpu as pltpu


def _lora_kernel(x_ref, wa_ref, wb_ref, prev_ref, o_ref):
    """One M-tile of: out = (X @ Wa) @ Wb + prev, with Wa=(in,rank), Wb=(rank,out)."""
    x = x_ref[...]                                     # (tm, in)
    wa = wa_ref[...]                                   # (in, rank)   resident
    wb = wb_ref[...]                                   # (rank, out)  resident
    # NN-form dots: no in-kernel transpose of the resident weights.
    h = jnp.dot(x, wa, preferred_element_type=jnp.float32)                    # (tm, rank)
    y = jnp.dot(h.astype(wb.dtype), wb, preferred_element_type=jnp.float32)   # (tm, out)
    o_ref[...] = (y + prev_ref[...].astype(jnp.float32)).astype(o_ref.dtype)


def _vmem_capacity_bytes():
    try:
        return int(pltpu.get_tpu_info().vmem_capacity_bytes)
    except Exception:
        return 64 * 1024 * 1024  # conservative (v7x per-TC) fallback


def _round_up(x, m):
    return ((x + m - 1) // m) * m


def _resident_spec(shape):
    """Full-array, never-refetched weight block; single-buffered if supported."""
    idx = lambda i: (0, 0)
    try:
        return pl.BlockSpec(shape, idx, pipeline_mode=pl.Buffered(1))
    except TypeError:  # older API without pipeline_mode kwarg
        return pl.BlockSpec(shape, idx)


def _choose_tm(in_size, out_pad, rank, x_item, p_item, o_item, w_item, vmem_limit):
    # Streams (X, prev, out) are double-buffered by Pallas.
    per_row = (
        2 * (in_size * x_item + out_pad * p_item + out_pad * o_item)  # 2x-buffered streams
        + 4 * (rank + 2 * out_pad)                                    # f32 h, y, upcast prev
        + (4 * in_size if x_item < 4 else 0)                          # upcast of x for the dot
    )
    fixed = w_item * (in_size * rank + rank * out_pad)                # single-buffered weights
    budget = int(vmem_limit * 0.85) - fixed
    return max(1, min(budget // max(per_row, 1), 512))


def lora_forward(X, prev_res, Wa, Wb, *, tm=None, stream_dtype=None,
                 residual_dtype=None, out_dtype=None, vmem_limit_bytes=None):
    """LoRA forward.

    X: (..., in_size), prev_res: (..., out_size)
    Wa: (rank, in_size)   [nn.Linear(in, rank).weight]
    Wb: (out_size, rank)  [nn.Linear(rank, out).weight]
    stream_dtype:   optional narrow dtype for X / Wa / Wb HBM streams.
    residual_dtype: optional narrow dtype for prev_res stream (default: keep).
    out_dtype:      output dtype (default: prev_res.dtype).
    """
    if Wa is None or Wb is None:
        # Matches the PyTorch branch where A/B are None.
        return prev_res

    in_size = X.shape[-1]
    out_size = prev_res.shape[-1]
    lead = X.shape[:-1]
    M = 1
    for d in lead:
        M *= d

    if out_dtype is None:
        out_dtype = prev_res.dtype

    x2 = X.reshape(M, in_size)
    p2 = prev_res.reshape(M, out_size)

    # One-time tiny transposes in the wrapper -> NN-form dots in the kernel.
    wa = Wa.T  # (in_size, rank)
    wb = Wb.T  # (rank, out_size)

    if stream_dtype is not None:
        x2 = x2.astype(stream_dtype)
        wa = wa.astype(stream_dtype)
        wb = wb.astype(stream_dtype)
    if residual_dtype is not None:
        p2 = p2.astype(residual_dtype)

    # Lane-dense output: pad out dim to a multiple of 128 (zero-padded Wb cols
    # and prev cols), slice back after the call.  No-op for aligned sizes.
    out_pad = out_size if out_size % 128 == 0 else _round_up(out_size, 128)
    if out_pad != out_size:
        pad = out_pad - out_size
        p2 = jnp.pad(p2, ((0, 0), (0, pad)))
        wb = jnp.pad(wb, ((0, 0), (0, pad)))

    rank = wa.shape[1]
    x_item = jnp.dtype(x2.dtype).itemsize
    p_item = jnp.dtype(p2.dtype).itemsize
    o_item = jnp.dtype(out_dtype).itemsize
    w_item = jnp.dtype(wb.dtype).itemsize
    min_item = min(x_item, p_item, o_item)
    sub = 8 if min_item >= 4 else (16 if min_item == 2 else 32)

    cap = _vmem_capacity_bytes()
    if vmem_limit_bytes is None:
        # ~80% of physical VMEM: leaves headroom for Mosaic internal scratch on
        # v7x's 64 MiB; generous on v5e/v6e's 128 MiB.
        vmem_limit_bytes = int(cap * 0.8)

    user_tm = tm is not None
    if not user_tm:
        tm = _choose_tm(in_size, out_pad, rank, x_item, p_item, o_item, w_item,
                        vmem_limit_bytes)

    tm = min(int(tm), M)
    if tm < M:
        # Sublane-align the row-block for this (narrowest) stream dtype.
        tm = max(sub, (tm // sub) * sub)
        tm = min(tm, M)

    if (not user_tm) and M > sub:
        # Megacore: guarantee >= 2 tiles so v7x's second TensorCore has work;
        # prefer an even tile count for a balanced split.  Harmless on 1-TC chips.
        half = _round_up(pl.cdiv(M, 2), sub)
        if half < M:
            tm = min(tm, half)
        nt = pl.cdiv(M, tm)
        if nt > 1 and nt % 2 == 1:
            tm_even = _round_up(pl.cdiv(M, nt + 1), sub)
            if tm_even >= sub and pl.cdiv(M, tm_even) % 2 == 0:
                tm = tm_even

    grid = (pl.cdiv(M, tm),)  # partial last block is masked by Pallas

    out = pl.pallas_call(
        _lora_kernel,
        out_shape=jax.ShapeDtypeStruct((M, out_pad), out_dtype),
        grid_spec=pltpu.PrefetchScalarGridSpec(
            num_scalar_prefetch=0,
            grid=grid,
            in_specs=[
                pl.BlockSpec((tm, in_size), lambda i: (i, 0)),    # X rows (streamed)
                _resident_spec((in_size, rank)),                  # Wa.T (resident, 1-buf)
                _resident_spec((rank, out_pad)),                  # Wb.T (resident, 1-buf)
                pl.BlockSpec((tm, out_pad), lambda i: (i, 0)),    # prev rows (streamed)
            ],
            out_specs=pl.BlockSpec((tm, out_pad), lambda i: (i, 0)),
        ),
        compiler_params=pltpu.CompilerParams(
            dimension_semantics=("parallel",),      # megacore-shard M on v7x
            vmem_limit_bytes=int(vmem_limit_bytes),
        ),
    )(x2, wa, wb, p2)

    if out_pad != out_size:
        out = out[:, :out_size]
    return out.reshape(*lead, out_size)


if __name__ == "__main__":
    # Small shapes consistent with the module: LoraLayer(input_size=32,
    # output_size=32, rank=8) applied to X of shape (batch=2, seq=8, 32).
    batch, seq = 2, 8
    input_size, output_size, rank = 32, 32, 8

    key = jax.random.PRNGKey(0)
    kx, kp, ka, kb = jax.random.split(key, 4)

    X = jax.random.normal(kx, (batch, seq, input_size), dtype=jnp.float32)
    prev_res = jax.random.normal(kp, (batch, seq, output_size), dtype=jnp.float32)

    # Deterministic synthetic weights (nn.Linear weight shapes: (out, in)).
    Wa = jax.random.normal(ka, (rank, input_size), dtype=jnp.float32) * 0.1
    Wb = jax.random.normal(kb, (output_size, rank), dtype=jnp.float32) * 0.1

    ref = (X @ Wa.T) @ Wb.T + prev_res

    # 1) f32, auto tile size (collapses to 2 even tiles here for megacore).
    out = jax.block_until_ready(lora_forward(X, prev_res, Wa, Wb))
    assert out.shape == ref.shape
    assert jnp.allclose(out, ref, atol=1e-5, rtol=1e-5)

    # 2) Explicit tm=8 -> grid of 2 steps.
    out_t = jax.block_until_ready(lora_forward(X, prev_res, Wa, Wb, tm=8))
    assert jnp.allclose(out_t, ref, atol=1e-5, rtol=1e-5)

    # 3) Ragged M (M % tm != 0): Pallas masks the partial last block.
    Xr, pr = X[:, :7, :], prev_res[:, :7, :]
    outr = jax.block_until_ready(lora_forward(Xr, pr, Wa, Wb, tm=8))
    refr = (Xr @ Wa.T) @ Wb.T + pr
    assert jnp.allclose(outr, refr, atol=1e-5, rtol=1e-5)

    # 4) bf16 streaming for X/Wa/Wb only: residual + output stay f32, so the
    #    error is confined to the low-rank update (tight tolerance).
    out_mix = jax.block_until_ready(
        lora_forward(X, prev_res, Wa, Wb, stream_dtype=jnp.bfloat16))
    assert jnp.allclose(out_mix, ref, atol=2e-2, rtol=2e-2)

    # 5) All-bf16 streaming (max HBM-byte savings): residual and output in bf16 too.
    out_bf16 = jax.block_until_ready(
        lora_forward(X, prev_res, Wa, Wb, stream_dtype=jnp.bfloat16,
                     residual_dtype=jnp.bfloat16, out_dtype=jnp.bfloat16))
    assert out_bf16.dtype == jnp.bfloat16
    assert jnp.allclose(out_bf16.astype(jnp.float32), ref, atol=5e-2, rtol=5e-2)

    # 6) rank=None path returns prev_res unchanged.
    passthrough = lora_forward(X, prev_res, None, None)
    assert jnp.array_equal(passthrough, prev_res)

    print("KERNEL_OK")
</pallas_src>

<mosaic_0001>
module attributes {stable_mosaic.version = 11 : i64} {
  func.func @_lora_kernel(%arg0: i32, %arg1: memref<8x32xf32, #tpu.memory_space<vmem>>, %arg2: memref<32x8xf32, #tpu.memory_space<vmem>>, %arg3: memref<8x128xf32, #tpu.memory_space<vmem>>, %arg4: memref<8x128xf32, #tpu.memory_space<vmem>>, %arg5: memref<8x128xf32, #tpu.memory_space<vmem>>) attributes {dimension_semantics = [#tpu.dimension_semantics<parallel>], iteration_bounds = array<i64: 2>, scalar_prefetch = 0 : i64, scratch_operands = 0 : i64, tpu.core_type = #tpu.core_type<tc>, window_params = [{transform_indices = @transform_0, window_bounds = array<i64: 8, 32>}, {pipeline_mode = #tpu.pipeline_mode<synchronous>, transform_indices = @transform_1, window_bounds = array<i64: 32, 8>}, {pipeline_mode = #tpu.pipeline_mode<synchronous>, transform_indices = @transform_2, window_bounds = array<i64: 8, 128>}, {transform_indices = @transform_3, window_bounds = array<i64: 8, 128>}, {transform_indices = @transform_4, window_bounds = array<i64: 8, 128>}]} {
    %c0 = arith.constant 0 : index
    %c0_0 = arith.constant 0 : index
    %0 = vector.load %arg1[%c0, %c0_0] : memref<8x32xf32, #tpu.memory_space<vmem>>, vector<8x32xf32>
    %c0_1 = arith.constant 0 : index
    %c0_2 = arith.constant 0 : index
    %1 = vector.load %arg2[%c0_1, %c0_2] : memref<32x8xf32, #tpu.memory_space<vmem>>, vector<32x8xf32>
    %c0_3 = arith.constant 0 : index
    %c0_4 = arith.constant 0 : index
    %2 = vector.load %arg3[%c0_3, %c0_4] : memref<8x128xf32, #tpu.memory_space<vmem>>, vector<8x128xf32>
    %cst = arith.constant dense<0.000000e+00> : vector<8x8xf32>
    %3 = tpu.matmul %0, %1, %cst {dimension_numbers = #tpu.dot_dimension_numbers<[1], [0], [0], [1], [0, 0, 1, 1], [], []>} : vector<8x32xf32>, vector<32x8xf32>, vector<8x8xf32> -> vector<8x8xf32>
    %cst_5 = arith.constant dense<0.000000e+00> : vector<8x128xf32>
    %4 = tpu.matmul %3, %2, %cst_5 {dimension_numbers = #tpu.dot_dimension_numbers<[1], [0], [0], [1], [0, 0, 1, 1], [], []>} : vector<8x8xf32>, vector<8x128xf32>, vector<8x128xf32> -> vector<8x128xf32>
    %c0_6 = arith.constant 0 : index
    %c0_7 = arith.constant 0 : index
    %5 = vector.load %arg4[%c0_6, %c0_7] : memref<8x128xf32, #tpu.memory_space<vmem>>, vector<8x128xf32>
    %6 = arith.addf %4, %5 : vector<8x128xf32>
    %c0_8 = arith.constant 0 : index
    %c0_9 = arith.constant 0 : index
    %7 = vector.load %arg5[%c0_8, %c0_9] : memref<8x128xf32, #tpu.memory_space<vmem>>, vector<8x128xf32>
    tpu.vector_store %arg5[%c0_8, %c0_9], %6 {strides = array<i32>} : memref<8x128xf32, #tpu.memory_space<vmem>>, vector<8x128xf32>,
    return
  }
  func.func @transform_0(%arg0: i32) -> (i32, i32) {
    %c0_i32 = arith.constant 0 : i32
    %c0_i32_0 = arith.constant 0 : i32
    return %arg0, %c0_i32 : i32, i32
  }
  func.func @transform_1(%arg0: i32) -> (i32, i32) {
    %c0_i32 = arith.constant 0 : i32
    %c0_i32_0 = arith.constant 0 : i32
    %c0_i32_1 = arith.constant 0 : i32
    return %c0_i32, %c0_i32_0 : i32, i32
  }
  func.func @transform_2(%arg0: i32) -> (i32, i32) {
    %c0_i32 = arith.constant 0 : i32
    %c0_i32_0 = arith.constant 0 : i32
    %c0_i32_1 = arith.constant 0 : i32
    return %c0_i32, %c0_i32_0 : i32, i32
  }
  func.func @transform_3(%arg0: i32) -> (i32, i32) {
    %c0_i32 = arith.constant 0 : i32
    %c0_i32_0 = arith.constant 0 : i32
    return %arg0, %c0_i32 : i32, i32
  }
  func.func @transform_4(%arg0: i32) -> (i32, i32) {
    %c0_i32 = arith.constant 0 : i32
    %c0_i32_0 = arith.constant 0 : i32
    return %arg0, %c0_i32 : i32, i32
  }
}

</mosaic_0001>

<bundles_post_ra>
// kernel: tpu_custom_call.1
= control target key start
LH: loop header
LB: loop body
LE: loop exit
PB: predicated region body
PF: predicated region fallthrough
CT: control target
= control target key end

     0   :  { %9 = vsyncpa [#allocation3], 0  ;;  %s597_s0 = inlined_call_operand.vmem [shape: f32[16,32], index: 0, kind: input, shape index: {}]   ;;  %s598_s1 = inlined_call_operand.vmem [shape: f32[32,8], index: 1, kind: input, shape index: {}]   ;;  %s599_s2 = inlined_call_operand.vmem [shape: f32[8,128], index: 2, kind: input, shape index: {}]   ;;  %s600_s3 = inlined_call_operand.vmem [shape: f32[16,128], index: 3, kind: input, shape index: {}]   ;;  %s601_s4 = inlined_call_operand.hbm [shape: f32[16,128], index: 4, kind: output, shape index: {}]  }
   0x1   :  { %11 = vsyncpa [#allocation3 + $0x1], 0  ;;  %s494_s15 = smov 0   ;;  %s496_s16 = smov 0  }
   0x2   :  { %s498_s17 = smov 0   ;;  %s500_s18 = smov 0  }
   0x3 LB: > { %s515_s19 = sadd.s32 4294967295, %s467_s18   ;;  %s353_s20 = sadd.s32 4294967294, %s467_s18   ;;  %s467_s18 = sphi %s500_s18, %s607_s18   ;;  %s463_s17 = sphi %s498_s17, %s606_s17   ;;  %s459_s16 = sphi %s496_s16, %s605_s16   ;;  %s455_s15 = sphi %s494_s15, %s604_s15  }
   0x4   : > { %s519_s21 = sadd.s32 1, %s467_s18   ;;  %s118_s22 = sadd.s32 1, %s463_s17 }
   0x5   : > { %s115_s23 = ssub.s32 %s467_s18, %s519_s21  ;;  %p128_p0 = scmp.ne.s32.totalorder %s463_s17, %s459_s16 }
   0x6   : > { %p116_p1 = scmp.eq.s32.totalorder %s115_s23, 0  ;;  %p129_p2 = scmp.eq.s32.totalorder %s515_s19, 1 }
   0x7   : > { %p134_p3 = scmp.ne.s32.totalorder %s459_s16, %s455_s15  ;;  %p135_p4 = scmp.eq.s32.totalorder %s353_s20, 1 }
   0x8   : > { %s530_s24 = scalar_select %p116_p1, %s463_s17, %s118_s22  }
   0x9   : > { %p532_p5 = por %p129_p2, %p128_p0  ;;  %p536_p6 = por %p135_p4, %p134_p3 }
   0xa   : > { %p356_p7 = scmp.ge.s32.totalorder %s467_s18, 1  ;;  %p173_p8 = scmp.lt.s32.totalorder %s467_s18, 3 }
   0xc   : > { %p174_p9 = pnand %p356_p7, %p173_p8 }
   0xd   : > { %p202_p10 = scmp.lt.s32.totalorder (!%p174_p9), %s515_s19, 1  ;;  %s199_s22 = sand.u32 (!%p174_p9), 1, %s459_s16  }
   0xe   : > { %177 = sbr.rel (%p174_p9) target bundleno = 284 (0x11c), region = 36  ;;  %s357_s23 = sshll.u32 (!%p174_p9), %s199_s22, 3 }
   0xf   : > { %s363_s27 = sshll.u32 (!%p174_p9), %s515_s19, 3  ;;  %s201_s8 = scalar_lea.vmem (!%p174_p9), [#allocation2], %s357_s23 }
  0x10   : > { %s279_s9 = sshll.u32 (!%p174_p9), %s201_s8, 4  ;;  %s267_s12 = scalar_lea.sflag (!%p174_p9), [#allocation3], %s199_s22  ;;  %s280_s9 = int_to_ptr.vmem [resolvable:$true] %s279_s9 }
  0x11   : > { %s425_s20 = scalar_lea.hbm (!%p174_p9), %s601_s4, 16 }
  0x13   : > { %v214_v0 = vld [vmem:[%s598_s1 + $0x18] sm:$0xff]  ;;  %v213_v1 = vld [vmem:[%s598_s1 + $0x10] sm:$0xff]  ;;  %v212_v2 = vld [vmem:[%s598_s1 + $0x8] sm:$0xff]  ;;  %s203_s7 = scalar_select %p202_p10, %s515_s19, 1  ;;  %vm216_vm0 = vcmask 261120   ;;  %vm241_vm1 = vcmask 64512  }
  0x14   : > { %232 = vmatpush.msra.mxu0 %v214_v0  ;;  %v211_v3 = vld [vmem:[%s598_s1] sm:$0xff] }
  0x15   : > { %s358_s10 = sshll.u32 %s203_s7, 3  ;;  %v215_v5 = vld [vmem:[%s599_s2] sm:$0xff]  ;;  %s277_s7 = scalar_lea.hbm %s601_s4, %s363_s27 }
  0x16   : > { %233 = vmatpush.msra.mxu0 %v213_v1  ;;  %s205_s13 = scalar_lea.vmem %s597_s0, %s358_s10  ;;  %260 = vmatpush.msra.mxu1 %v215_v5  ;;  %s209_s30 = scalar_lea.vmem %s600_s3, %s358_s10 }
  0x17   : > { %v210_v4 = vld [vmem:[%s205_s13] sm:$0xff]  ;;  %s281_s11 = sshll.u32 %s277_s7, 4  ;;  %s282_s11 = int_to_ptr.hbm [resolvable:$true] %s281_s11 }
  0x18   : > { %234 = vmatpush.msra.mxu0 %v212_v2  ;;  %v240_v7 = vld [vmem:[%s209_s30] sm:$0xff]  ;;  %s419_s19 = sshra.s32 %s282_s11, 4  ;;  %s420_s19 = int_to_ptr.hbm [resolvable:$true] %s419_s19 }
  0x19   : > { %s421_s13 = scalar_lea.hbm %s420_s19, 8  ;;  %p426_p0 = scmp.lt.s32.totalorder %s420_s19, %s601_s4 }
  0x1a   : > { %235 = vmatpush.msra.mxu0 %v211_v3  ;;  %p422_p11 = scmp.ne.s32.totalorder %s420_s19, %s421_s13  ;;  %p427_p1 = scmp.lt.s32.totalorder %s425_s20, %s421_s13 }
  0x1b   : > { %360 = vmatmul.msk.f32.vlgmr.msra.gmra.mxu0 %vm216_vm0, %v210_v4 }
  0x1c   : > { %p423_p12 = pnand %p422_p11, %p532_p5  ;;  %p428_p2 = por %p427_p1, %p426_p0 }
  0x1e   : > { %p424_p13 = pneg %p423_p12 }
  0x20   : > { %p429_p3 = pnand %p428_p2, %p424_p13 }
  0x98   : > { %v237_v6 = vpop.f32.mrf.mxu0 }
  0x99   : > { %361 = vmatmul.msk.f32.vlgmr.msra.gmra.mxu1 %vm241_vm1, %v237_v6 }
 0x116   : > { %v262_v8 = vpop.f32.mrf.mxu1 }
 0x117   : > { %v263_v9 = vadd.f32 %v262_v8, %v240_v7 }
 0x119   : > { %265 = vst [vmem:[%s201_s8] sm:$0xff] %v263_v9 }
 0x11a   : > { %432 = shalt.err (!%p429_p3)
}
 0x11b   : > { %366 = dma.vmem_to_hbm [thread:$0]  (%p532_p5), %s280_s9, 128, %s282_s11, %s267_s12  }
 0x11c PF: > { %p372_p4 = scmp.ge.s32.totalorder %s467_s18, 2  ;;  %s293_s22 = sand.u32 1, %s455_s15  }
 0x11d   : > { %s294_s28 = scalar_lea.sflag [#allocation3], %s293_s22 }
 0x11e   : > { %p369_p7 = pnand %p372_p4, %p536_p6 }
 0x120   : > { %p370_p8 = pneg %p369_p7 }
 0x122   : > { %450 = dma.done.wait (%p370_p8), %s294_s28, 128  }
 0x123   : > { %452 = vsyncadd (%p370_p8), %s294_s28, 4294967168  ;;  %p14_p9 = scmp.ge.s32.totalorder %s519_s21, 4   ;;  %s604_s15 = smov %s459_s16 }
 0x124   : > { %s605_s16 = smov %s463_s17  ;;  %s606_s17 = smov %s530_s24 }
 0x125   : > { %s607_s18 = smov %s519_s21  ;;  %16 = sbr.rel (!%p14_p9) target bundleno = 3 (0x3), region = 74 }
 0x12a   :  { %300 = vsyncpa [#allocation3], 1 }
 0x12b   :  { %302 = vsyncpa [#allocation3 + $0x1], 1 }

</bundles_post_ra>
